<compile_context>
chip_gen: v7x
topology: tpu7x:2x2x1
jax: 0.10.0
libtpu: 0.0.40
codegen_flags: <defaults>
</compile_context>

<pallas_src>
import jax
import jax.numpy as jnp
from jax.experimental import pallas as pl
from jax.experimental.pallas import tpu as pltpu


def _add_relu_kernel(a_ref, b_ref, o_ref):
    o_ref[...] = jnp.maximum(a_ref[...] + b_ref[...], 0)


# Below this many elements, let XLA fuse relu(x+y) (a standalone Pallas launch
# only adds fixed overhead and defeats fusion into the producer's epilogue).
_XLA_FALLBACK_ELEMS = 16 * 1024

_MAX_WIDTH = 4096
_MIN_GRID_BLOCKS = 4  # >=2 engages v7x's 2nd TensorCore; >=4 keeps the pipeline busy


def _device_vmem_config():
    """Returns (target block bytes per operand, scoped vmem limit), generation-aware."""
    try:
        vmem = pltpu.get_tpu_info().vmem_capacity_bytes
    except Exception:
        vmem = None
    if vmem is not None and vmem > 64 * 1024 * 1024:
        # v5e / v6e class (128 MiB VMEM): bigger streaming blocks amortize
        # per-step overhead; 4 MiB x 3 operands x 2 buffers = 24 MiB < 64 MiB.
        return 4 * 1024 * 1024, 64 * 1024 * 1024
    # v7x class (64 MiB physical VMEM) or unknown: stay conservative.
    # 2 MiB x 3 operands x 2 buffers = 12 MiB, well under the 32 MiB scoped limit.
    return 2 * 1024 * 1024, 32 * 1024 * 1024


def _pick_width(total, sublane):
    """Widest lane-dense width (multiple of 128, <= _MAX_WIDTH) dividing `total`.

    Prefers a factorization whose row count is a multiple of `sublane` so all
    sublane tiles are full (unmasked vst); otherwise the widest divisor."""
    widest = None
    start = (min(_MAX_WIDTH, total) // 128) * 128
    for w in range(start, 127, -128):
        if total % w:
            continue
        if widest is None:
            widest = w
        if (total // w) % sublane == 0:
            return w  # widest alignment-friendly factorization
    return widest


def add_relu(x, y):
    """Fused (x + y).relu() via a Pallas TPU kernel. x, y: same shape/dtype."""
    assert x.shape == y.shape and x.dtype == y.dtype
    orig_shape = x.shape
    dtype = x.dtype
    total = x.size
    itemsize = jnp.dtype(dtype).itemsize

    # Tiny or lane-unfriendly sizes: plain JAX so XLA can fuse it.
    if total < _XLA_FALLBACK_ELEMS or total % 128 != 0:
        return jnp.maximum(x + y, 0)

    # Minimum full sublane tile per dtype: 8 rows f32, 16 bf16/f16, 32 int8/fp8.
    sublane = max(8, 32 // itemsize)

    width = _pick_width(total, sublane)
    if width is None:  # unreachable given total % 128 == 0, but be safe
        return jnp.maximum(x + y, 0)
    rows = total // width

    # Contiguous reshape: no HBM copy, no padding.
    x2 = x.reshape(rows, width)
    y2 = y.reshape(rows, width)

    target_block_bytes, vmem_limit = _device_vmem_config()

    # Rows per block from the per-operand byte budget, rounded to the sublane tile.
    row_tile = max(sublane,
                   (target_block_bytes // (width * itemsize)) // sublane * sublane)
    # Cap so the grid has at least _MIN_GRID_BLOCKS steps when the slab allows:
    # overlaps writeback of block i with fetch of block i+1 and lets v7x shard
    # the 'parallel' axis across both TensorCores.
    if rows >= _MIN_GRID_BLOCKS * sublane:
        cap = (rows // _MIN_GRID_BLOCKS) // sublane * sublane
        row_tile = min(row_tile, max(sublane, cap))
    row_tile = min(row_tile, rows)  # binds only when rows < sublane (full-dim block)

    grid = (pl.cdiv(rows, row_tile),)  # ragged last block masked by Pallas

    cost = pl.CostEstimate(
        flops=2 * total,
        transcendentals=0,
        bytes_accessed=3 * total * itemsize,
    )

    out2 = pl.pallas_call(
        _add_relu_kernel,
        out_shape=jax.ShapeDtypeStruct((rows, width), dtype),
        grid=grid,
        in_specs=[
            pl.BlockSpec((row_tile, width), lambda i: (i, 0)),
            pl.BlockSpec((row_tile, width), lambda i: (i, 0)),
        ],
        out_specs=pl.BlockSpec((row_tile, width), lambda i: (i, 0)),
        compiler_params=pltpu.CompilerParams(
            dimension_semantics=("parallel",),
            vmem_limit_bytes=vmem_limit,
        ),
        cost_estimate=cost,
    )(x2, y2)

    return out2.reshape(orig_shape)


if __name__ == "__main__":
    key = jax.random.PRNGKey(0)
    k1, k2 = jax.random.split(key)
    # Shapes from the original module: x189, x197 are (1, 1344, 14, 14) f32 (~1 MiB each).
    shape = (1, 1344, 14, 14)
    x189 = jax.random.normal(k1, shape, dtype=jnp.float32)
    x197 = jax.random.normal(k2, shape, dtype=jnp.float32)

    out = add_relu(x189, x197)
    jax.block_until_ready(out)

    # Correctness check against plain JAX reference.
    ref = jnp.maximum(x189 + x197, 0.0)
    assert out.shape == ref.shape
    assert jnp.allclose(out, ref, atol=1e-6), "mismatch vs reference"

    print("KERNEL_OK")
</pallas_src>

<mosaic_0001>
module attributes {stable_mosaic.version = 11 : i64} {
  func.func @_add_relu_kernel(%arg0: i32, %arg1: memref<24x2688xf32, #tpu.memory_space<vmem>>, %arg2: memref<24x2688xf32, #tpu.memory_space<vmem>>, %arg3: memref<24x2688xf32, #tpu.memory_space<vmem>>) attributes {dimension_semantics = [#tpu.dimension_semantics<parallel>], iteration_bounds = array<i64: 5>, scalar_prefetch = 0 : i64, scratch_operands = 0 : i64, tpu.core_type = #tpu.core_type<tc>, window_params = [{transform_indices = @transform_0, window_bounds = array<i64: 24, 2688>}, {transform_indices = @transform_1, window_bounds = array<i64: 24, 2688>}, {transform_indices = @transform_2, window_bounds = array<i64: 24, 2688>}]} {
    %c0 = arith.constant 0 : index
    %c0_0 = arith.constant 0 : index
    %0 = vector.load %arg1[%c0, %c0_0] : memref<24x2688xf32, #tpu.memory_space<vmem>>, vector<24x2688xf32>
    %c0_1 = arith.constant 0 : index
    %c0_2 = arith.constant 0 : index
    %1 = vector.load %arg2[%c0_1, %c0_2] : memref<24x2688xf32, #tpu.memory_space<vmem>>, vector<24x2688xf32>
    %2 = arith.addf %0, %1 : vector<24x2688xf32>
    %cst = arith.constant 0.000000e+00 : f32
    %3 = vector.broadcast %cst : f32 to vector<24x2688xf32>
    %4 = arith.maximumf %2, %3 : vector<24x2688xf32>
    %c0_3 = arith.constant 0 : index
    %c0_4 = arith.constant 0 : index
    %5 = vector.load %arg3[%c0_3, %c0_4] : memref<24x2688xf32, #tpu.memory_space<vmem>>, vector<24x2688xf32>
    tpu.vector_store %arg3[%c0_3, %c0_4], %4 {strides = array<i32>} : memref<24x2688xf32, #tpu.memory_space<vmem>>, vector<24x2688xf32>,
    return
  }
  func.func @transform_0(%arg0: i32) -> (i32, i32) {
    %c0_i32 = arith.constant 0 : i32
    %c0_i32_0 = arith.constant 0 : i32
    return %arg0, %c0_i32 : i32, i32
  }
  func.func @transform_1(%arg0: i32) -> (i32, i32) {
    %c0_i32 = arith.constant 0 : i32
    %c0_i32_0 = arith.constant 0 : i32
    return %arg0, %c0_i32 : i32, i32
  }
  func.func @transform_2(%arg0: i32) -> (i32, i32) {
    %c0_i32 = arith.constant 0 : i32
    %c0_i32_0 = arith.constant 0 : i32
    return %arg0, %c0_i32 : i32, i32
  }
}

</mosaic_0001>

<bundles_post_ra>
// kernel: tpu_custom_call.1
= control target key start
LH: loop header
LB: loop body
LE: loop exit
PB: predicated region body
PF: predicated region fallthrough
CT: control target
= control target key end

     0   :  { %7 = vsyncpa [#allocation3], 0  ;;  %s1320_s0 = inlined_call_operand.hbm [shape: f32[98,2688], index: 0, kind: input, shape index: {}]   ;;  %s1321_s1 = inlined_call_operand.hbm [shape: f32[98,2688], index: 1, kind: input, shape index: {}]   ;;  %s1322_s2 = inlined_call_operand.hbm [shape: f32[98,2688], index: 2, kind: output, shape index: {}]  }
   0x1   :  { %9 = vsyncpa [#allocation3 + $0x1], 0 }
   0x2   :  { %10 = vsyncpa [#allocation6], 0 }
   0x3   :  { %12 = vsyncpa [#allocation6 + $0x1], 0 }
   0x4   :  { %13 = vsyncpa [#allocation4], 0 }
   0x5   :  { %15 = vsyncpa [#allocation4 + $0x1], 0  ;;  %s897_s9 = smov 0   ;;  %s899_s10 = smov 0  }
   0x6   :  { %s901_s11 = smov 0   ;;  %s903_s12 = smov 0  }
   0x7 LB: > { %s918_s13 = sadd.s32 4294967295, %s871_s12   ;;  %s669_s14 = sadd.s32 4294967294, %s871_s12   ;;  %s871_s12 = sphi %s903_s12, %s1332_s12   ;;  %s867_s11 = sphi %s901_s11, %s1331_s11   ;;  %s863_s10 = sphi %s899_s10, %s1330_s10   ;;  %s859_s9 = sphi %s897_s9, %s1329_s9  }
   0x8   : > { %s922_s15 = sadd.s32 1, %s871_s12   ;;  %s28_s16 = sadd.s32 1, %s867_s11 }
   0x9   : > { %s25_s17 = ssub.s32 %s871_s12, %s922_s15  ;;  %p35_p0 = scmp.ne.s32.totalorder %s867_s11, %s863_s10 }
   0xa   : > { %p26_p1 = scmp.eq.s32.totalorder %s25_s17, 0  ;;  %p36_p2 = scmp.eq.s32.totalorder %s871_s12, 0 }
   0xb   : > { %p41_p3 = scmp.ne.s32.totalorder %s863_s10, %s859_s9  ;;  %p42_p4 = scmp.eq.s32.totalorder %s918_s13, 0 }
   0xc   : > { %s934_s18 = scalar_select %p26_p1, %s867_s11, %s28_s16  }
   0xd   : > { %p936_p5 = por %p36_p2, %p35_p0  ;;  %p940_p6 = por %p42_p4, %p41_p3 }
   0xe   : > { %p91_p7 = scmp.eq.s32.totalorder %s918_s13, 4  ;;  %p97_p8 = scmp.eq.s32.totalorder %s669_s14, 4 }
   0xf   : > { %p671_p11 = scmp.ge.s32.totalorder %s871_s12, 5 }
  0x10   : > { %p945_p9 = por %p91_p7, %p35_p0  ;;  %p949_p10 = por %p97_p8, %p41_p3 }
  0x11   : > { %113 = sbr.rel (%p671_p11) target bundleno = 96 (0x60), region = 16 }
  0x12   : > { %s1325_s21 = scalar_select %p945_p9, 1, 0 }
  0x13   : > { %s1326_s22 = scalar_select %p949_p10, 1, 0 }
  0x18   : > { %116 = sbr.rel (!%p936_p5) target bundleno = 60 (0x3c), region = 20  ;;  %s117_s23 = sand.u32 (%p936_p5), 1, %s867_s11  }
  0x19   : > { %s122_s24 = smul.u32 (%p936_p5), 3, %s871_s12  ;;  %s961_s29 = scalar_lea.sflag (%p936_p5), [#allocation3], %s117_s23 }
  0x1a   : > { %s690_s25 = smul.u32 (%p936_p5), 504, %s117_s23 }
  0x1b   : > { %s123_s26 = ssub.s32 (%p936_p5), 13, %s122_s24 }
  0x1c   : > { %p124_p12 = scmp.lt.s32.totalorder (%p936_p5), %s123_s26, 3  ;;  %s121_s30 = scalar_lea.vmem (%p936_p5), [#allocation2], %s690_s25 }
  0x1f   : > { %s1334_s26 = smov (!%p124_p12, %s123_s26), 3 }
  0x20   : > { %s958_s27 = smul.u32 2688, %s1334_s26 }
  0x22   : > { %s129_s28 = ssub.s32 8064, %s958_s27 }
  0x23   : > { %130 = vsyncadd %s961_s29, %s129_s28  ;;  %p674_p13 = scmp.ne.s32.totalorder %s958_s27, 0  ;;  %s703_s3 = smul.u32 8064, %s871_s12 }
  0x24   : > { %s136_s4 = sshll.u32 %s121_s30, 4  ;;  %s749_s17 = scalar_lea.hbm %s1320_s0, 34944  ;;  %s971_s4 = int_to_ptr.vmem [resolvable:$true] %s136_s4 }
  0x25   : > { %s969_s7 = scalar_lea.hbm %s1320_s0, %s703_s3 }
  0x26   : > { %s745_s8 = scalar_lea.hbm %s969_s7, %s958_s27  ;;  %p750_p3 = scmp.lt.u32.totalorder %s969_s7, %s1320_s0 }
  0x27   : > { %p746_p0 = scmp.ne.s32.totalorder %s969_s7, %s745_s8  ;;  %p751_p4 = scmp.lt.u32.totalorder %s749_s17, %s745_s8 }
  0x28   : > { %p753_p8 = scmp.lt.u32.totalorder %s745_s8, %s969_s7 }
  0x29   : > { %p747_p1 = pnand %p746_p0, %p674_p13  ;;  %p752_p7 = por %p751_p4, %p750_p3 }
  0x2b   : > { %p748_p2 = pneg %p747_p1  ;;  %p754_p11 = por %p753_p8, %p752_p7 }
  0x2d   : > { %p755_p12 = pnand %p754_p11, %p748_p2 }
  0x2f   : > { %758 = shalt.err (!%p755_p12)
}
  0x30   : > { %s759_s25 = scalar_lea.vmem %s971_s4, %s958_s27  ;;  %s873_s26 = smov [#allocation2]  }
  0x31   : > { %p760_p0 = scmp.ne.s32.totalorder %s971_s4, %s759_s25  ;;  %s763_s28 = sshll.u32 %s873_s26, 4  ;;  %s764_s28 = int_to_ptr.vmem [resolvable:$false] %s763_s28 }
  0x32   : > { %s765_s30 = scalar_lea.vmem %s764_s28, 16128  ;;  %p766_p9 = scmp.lt.s32.totalorder %s971_s4, %s764_s28 }
  0x33   : > { %p761_p1 = pnand %p760_p0, %p674_p13  ;;  %p767_p3 = scmp.lt.s32.totalorder %s765_s30, %s759_s25 }
  0x35   : > { %p762_p10 = pneg %p761_p1  ;;  %p768_p4 = por %p767_p3, %p766_p9 }
  0x37   : > { %p769_p7 = pnand %p768_p4, %p762_p10 }
  0x39   : > { %772 = shalt.err (!%p769_p7)
}
  0x3a   : > { %s874_s3 = smov 2688   ;;  %s875_s5 = smov 168  }
  0x3b   : > { %142 = dma.hbm_to_vmem [thread:$0]  (%p674_p13), %s969_s7, %s958_s27, %s971_s4, %s961_s29, %s874_s3, %s874_s3, %s875_s5  }
  0x3c PF: > { %145 = sbr.rel (!%p936_p5) target bundleno = 96 (0x60), region = 24  ;;  %s146_s6 = sand.u32 (%p936_p5), 1, %s867_s11  }
  0x3d   : > { %s151_s8 = smul.u32 (%p936_p5), 3, %s871_s12  ;;  %s1005_s24 = scalar_lea.sflag (%p936_p5), [#allocation6], %s146_s6 }
  0x3e   : > { %s692_s14 = smul.u32 (%p936_p5), 504, %s146_s6 }
  0x3f   : > { %s152_s16 = ssub.s32 (%p936_p5), 13, %s151_s8 }
  0x40   : > { %p153_p9 = scmp.lt.s32.totalorder (%p936_p5), %s152_s16, 3  ;;  %s150_s27 = scalar_lea.vmem (%p936_p5), [#allocation5], %s692_s14 }
  0x43   : > { %s1336_s16 = smov (!%p153_p9, %s152_s16), 3 }
  0x44   : > { %s1002_s17 = smul.u32 2688, %s1336_s16 }
  0x46   : > { %s158_s23 = ssub.s32 8064, %s1002_s17 }
  0x47   : > { %159 = vsyncadd %s1005_s24, %s158_s23  ;;  %p679_p5 = scmp.ne.s32.totalorder %s1002_s17, 0  ;;  %s704_s19 = smul.u32 8064, %s871_s12 }
  0x48   : > { %s165_s29 = sshll.u32 %s150_s27, 4  ;;  %s777_s3 = scalar_lea.hbm %s1321_s1, 34944  ;;  %s1015_s29 = int_to_ptr.vmem [resolvable:$true] %s165_s29 }
  0x49   : > { %s1013_s25 = scalar_lea.hbm %s1321_s1, %s704_s19 }
  0x4a   : > { %s773_s26 = scalar_lea.hbm %s1013_s25, %s1002_s17  ;;  %p778_p8 = scmp.lt.u32.totalorder %s1013_s25, %s1321_s1 }
  0x4b   : > { %p774_p10 = scmp.ne.s32.totalorder %s1013_s25, %s773_s26  ;;  %p779_p11 = scmp.lt.u32.totalorder %s777_s3, %s773_s26 }
  0x4c   : > { %p781_p0 = scmp.lt.u32.totalorder %s773_s26, %s1013_s25 }
  0x4d   : > { %p775_p13 = pnand %p774_p10, %p679_p5  ;;  %p780_p12 = por %p779_p11, %p778_p8 }
  0x4f   : > { %p776_p2 = pneg %p775_p13  ;;  %p782_p1 = por %p781_p0, %p780_p12 }
  0x51   : > { %p783_p3 = pnand %p782_p1, %p776_p2 }
  0x53   : > { %786 = shalt.err (!%p783_p3)
}
  0x54   : > { %s787_s8 = scalar_lea.vmem %s1015_s29, %s1002_s17  ;;  %s876_s14 = smov [#allocation5]  }
  0x55   : > { %p788_p4 = scmp.ne.s32.totalorder %s1015_s29, %s787_s8  ;;  %s791_s16 = sshll.u32 %s876_s14, 4  ;;  %s792_s16 = int_to_ptr.vmem [resolvable:$false] %s791_s16 }
  0x56   : > { %s793_s23 = scalar_lea.vmem %s792_s16, 16128  ;;  %p794_p10 = scmp.lt.s32.totalorder %s1015_s29, %s792_s16 }
  0x57   : > { %p789_p7 = pnand %p788_p4, %p679_p5  ;;  %p795_p13 = scmp.lt.s32.totalorder %s793_s23, %s787_s8 }
  0x59   : > { %p790_p9 = pneg %p789_p7  ;;  %p796_p8 = por %p795_p13, %p794_p10 }
  0x5b   : > { %p797_p11 = pnand %p796_p8, %p790_p9 }
  0x5d   : > { %800 = shalt.err (!%p797_p11)
}
  0x5e   : > { %s877_s27 = smov 2688   ;;  %s878_s19 = smov 168  }
  0x5f   : > { %171 = dma.hbm_to_vmem [thread:$0]  (%p679_p5), %s1013_s25, %s1002_s17, %s1015_s29, %s1005_s24, %s877_s27, %s877_s27, %s878_s19  }
  0x60 PF: > { %p682_p2 = scmp.ge.s32.totalorder %s871_s12, 1  ;;  %p173_p12 = scmp.lt.s32.totalorder %s871_s12, 6 }
  0x62   : > { %p174_p0 = pnand %p682_p2, %p173_p12 }
  0x63   : > { %s1045_s4 = sand.u32 (!%p174_p0), 1, %s863_s10  }
  0x64   : > { %177 = sbr.rel (%p174_p0) target bundleno = 191 (0xbf), region = 28  ;;  %s180_s26 = scalar_lea.sflag (!%p174_p0), [#allocation3], %s1045_s4 }
  0x65   : > { %s1048_s7 = smul.u32 (!%p174_p0), 504, %s1045_s4 }
  0x67   : > { %s1052_s28 = scalar_lea.vmem (!%p174_p0), [#allocation2], %s1048_s7 }
  0x6b   : > { %846 = dma.done.wait (%p940_p6), %s180_s26, 8064  }
  0x6c   : > { %848 = vsyncadd (%p940_p6), %s180_s26, 4294959232  ;;  %s189_s17 = scalar_lea.sflag [#allocation6], %s1045_s4  ;;  %s1060_s24 = scalar_lea.vmem [#allocation5], %s1048_s7 }
  0x6d   : > { %850 = dma.done.wait (%p940_p6), %s189_s17, 8064  }
  0x6e   : > { %852 = vsyncadd (%p940_p6), %s189_s17, 4294959232  ;;  %v236_v0 = vld [vmem:[%s1052_s28] sm:$0xff]  ;;  %v299_v1 = vld [vmem:[%s1060_s24] sm:$0xff]  ;;  %s1082_s20 = scalar_lea.vmem [#allocation7], %s1048_s7  ;;  %s552_s29 = scalar_lea.sflag [#allocation4], %s1045_s4 }
  0x6f   : > { %v237_v2 = vld [vmem:[%s1052_s28 + $0x8] sm:$0xff]  ;;  %v362_v3 = vadd.f32 %v299_v1, %v236_v0  ;;  %v300_v4 = vld [vmem:[%s1060_s24 + $0x8] sm:$0xff]  ;;  %v238_v5 = vld [vmem:[%s1052_s28 + $0x10] sm:$0xff]  ;;  %p1327_p6 = scmp.ne.s32.totalorder %s1325_s21, 0 }
  0x70   : > { %v301_v6 = vld [vmem:[%s1060_s24 + $0x10] sm:$0xff]  ;;  %v363_v7 = vadd.f32 %v300_v4, %v237_v2  ;;  %v239_v9 = vld [vmem:[%s1052_s28 + $0x18] sm:$0xff]  ;;  %v302_v10 = vld [vmem:[%s1060_s24 + $0x18] sm:$0xff]  ;;  %s559_s25 = smul.u32 (%p1327_p6), 3, %s918_s13 }
  0x71   : > { %v364_v8 = vadd.f32 %v301_v6, %v238_v5  ;;  %v240_v11 = vld [vmem:[%s1052_s28 + $0x20] sm:$0xff]  ;;  %v425_v12 = vmax.f32 %v362_v3, 0.0  ;;  %v365_v13 = vadd.f32 %v302_v10, %v239_v9  ;;  %v303_v14 = vld [vmem:[%s1060_s24 + $0x20] sm:$0xff]  ;;  %v241_v15 = vld [vmem:[%s1052_s28 + $0x28] sm:$0xff] }
  0x72   : > { %v304_v16 = vld [vmem:[%s1060_s24 + $0x28] sm:$0xff]  ;;  %v426_v17 = vmax.f32 %v363_v7, 0.0  ;;  %v366_v19 = vadd.f32 %v303_v14, %v240_v11  ;;  %v242_v21 = vld [vmem:[%s1052_s28 + $0x30] sm:$0xff]  ;;  %v305_v22 = vld [vmem:[%s1060_s24 + $0x30] sm:$0xff]  ;;  %s560_s30 = ssub.s32 (%p1327_p6), 13, %s559_s25 }
  0x73   : > { %v427_v18 = vmax.f32 %v364_v8, 0.0  ;;  %v367_v20 = vadd.f32 %v304_v16, %v241_v15  ;;  %v243_v23 = vld [vmem:[%s1052_s28 + $0x38] sm:$0xff]  ;;  %488 = vst [vmem:[%s1082_s20] sm:$0xff] %v425_v12  ;;  %v428_v24 = vmax.f32 %v365_v13, 0.0  ;;  %v368_v25 = vadd.f32 %v305_v22, %v242_v21  ;;  %v306_v26 = vld [vmem:[%s1060_s24 + $0x38] sm:$0xff]  ;;  %v244_v27 = vld [vmem:[%s1052_s28 + $0x40] sm:$0xff]  ;;  %p561_p5 = scmp.lt.s32.totalorder (%p1327_p6), %s560_s30, 3 }
  0x74   : > { %v307_v28 = vld [vmem:[%s1060_s24 + $0x40] sm:$0xff]  ;;  %489 = vst [vmem:[%s1082_s20 + $0x8] sm:$0xff] %v426_v17  ;;  %v429_v29 = vmax.f32 %v366_v19, 0.0  ;;  %v369_v31 = vadd.f32 %v306_v26, %v243_v23  ;;  %v245_v33 = vld [vmem:[%s1052_s28 + $0x48] sm:$0xff]  ;;  %v308_v34 = vld [vmem:[%s1060_s24 + $0x48] sm:$0xff] }
  0x75   : > { %490 = vst [vmem:[%s1082_s20 + $0x10] sm:$0xff] %v427_v18  ;;  %v430_v30 = vmax.f32 %v367_v20, 0.0  ;;  %v370_v32 = vadd.f32 %v307_v28, %v244_v27  ;;  %v246_v35 = vld [vmem:[%s1052_s28 + $0x50] sm:$0xff]  ;;  %491 = vst [vmem:[%s1082_s20 + $0x18] sm:$0xff] %v428_v24  ;;  %v431_v36 = vmax.f32 %v368_v25, 0.0  ;;  %v371_v37 = vadd.f32 %v308_v34, %v245_v33  ;;  %v309_v38 = vld [vmem:[%s1060_s24 + $0x50] sm:$0xff] }
  0x76   : > { %v247_v39 = vld [vmem:[%s1052_s28 + $0x58] sm:$0xff]  ;;  %v310_v40 = vld [vmem:[%s1060_s24 + $0x58] sm:$0xff]  ;;  %492 = vst [vmem:[%s1082_s20 + $0x20] sm:$0xff] %v429_v29  ;;  %v432_v41 = vmax.f32 %v369_v31, 0.0  ;;  %v372_v43 = vadd.f32 %v309_v38, %v246_v35  ;;  %v248_v45 = vld [vmem:[%s1052_s28 + $0x60] sm:$0xff] }
  0x77   : > { %493 = vst [vmem:[%s1082_s20 + $0x28] sm:$0xff] %v430_v30  ;;  %v433_v42 = vmax.f32 %v370_v32, 0.0  ;;  %v373_v44 = vadd.f32 %v310_v40, %v247_v39  ;;  %v311_v46 = vld [vmem:[%s1060_s24 + $0x60] sm:$0xff]  ;;  %v249_v47 = vld [vmem:[%s1052_s28 + $0x68] sm:$0xff]  ;;  %494 = vst [vmem:[%s1082_s20 + $0x30] sm:$0xff] %v431_v36  ;;  %v434_v48 = vmax.f32 %v371_v37, 0.0 }
  0x78   : > { %v374_v49 = vadd.f32 %v311_v46, %v248_v45  ;;  %v312_v50 = vld [vmem:[%s1060_s24 + $0x68] sm:$0xff]  ;;  %v250_v51 = vld [vmem:[%s1052_s28 + $0x70] sm:$0xff]  ;;  %v313_v52 = vld [vmem:[%s1060_s24 + $0x70] sm:$0xff]  ;;  %495 = vst [vmem:[%s1082_s20 + $0x38] sm:$0xff] %v432_v41  ;;  %v435_v53 = vmax.f32 %v372_v43, 0.0 }
  0x79   : > { %496 = vst [vmem:[%s1082_s20 + $0x40] sm:$0xff] %v433_v42  ;;  %v436_v54 = vmax.f32 %v373_v44, 0.0  ;;  %v375_v55 = vadd.f32 %v312_v50, %v249_v47  ;;  %v376_v56 = vadd.f32 %v313_v52, %v250_v51  ;;  %v251_v57 = vld [vmem:[%s1052_s28 + $0x78] sm:$0xff]  ;;  %v314_v58 = vld [vmem:[%s1060_s24 + $0x78] sm:$0xff]  ;;  %v252_v59 = vld [vmem:[%s1052_s28 + $0x80] sm:$0xff] }
  0x7a   : > { %497 = vst [vmem:[%s1082_s20 + $0x48] sm:$0xff] %v434_v48  ;;  %v437_v60 = vmax.f32 %v374_v49, 0.0  ;;  %v377_v61 = vadd.f32 %v314_v58, %v251_v57  ;;  %v315_v62 = vld [vmem:[%s1060_s24 + $0x80] sm:$0xff]  ;;  %v253_v63 = vld [vmem:[%s1052_s28 + $0x88] sm:$0xff]  ;;  %v316_v0 = vld [vmem:[%s1060_s24 + $0x88] sm:$0xff] }
  0x7b   : > { %498 = vst [vmem:[%s1082_s20 + $0x50] sm:$0xff] %v435_v53  ;;  %499 = vst [vmem:[%s1082_s20 + $0x58] sm:$0xff] %v436_v54  ;;  %v438_v1 = vmax.f32 %v375_v55, 0.0  ;;  %v439_v2 = vmax.f32 %v376_v56, 0.0  ;;  %v378_v3 = vadd.f32 %v315_v62, %v252_v59  ;;  %v379_v4 = vadd.f32 %v316_v0, %v253_v63  ;;  %v254_v5 = vld [vmem:[%s1052_s28 + $0x90] sm:$0xff]  ;;  %v317_v6 = vld [vmem:[%s1060_s24 + $0x90] sm:$0xff] }
  0x7c   : > { %v255_v7 = vld [vmem:[%s1052_s28 + $0x98] sm:$0xff]  ;;  %500 = vst [vmem:[%s1082_s20 + $0x60] sm:$0xff] %v437_v60  ;;  %v440_v8 = vmax.f32 %v377_v61, 0.0  ;;  %v380_v9 = vadd.f32 %v317_v6, %v254_v5  ;;  %v318_v10 = vld [vmem:[%s1060_s24 + $0x98] sm:$0xff]  ;;  %v256_v11 = vld [vmem:[%s1052_s28 + $0xa0] sm:$0xff] }
  0x7d   : > { %v319_v12 = vld [vmem:[%s1060_s24 + $0xa0] sm:$0xff]  ;;  %501 = vst [vmem:[%s1082_s20 + $0x68] sm:$0xff] %v438_v1  ;;  %502 = vst [vmem:[%s1082_s20 + $0x70] sm:$0xff] %v439_v2  ;;  %v441_v13 = vmax.f32 %v378_v3, 0.0  ;;  %v442_v14 = vmax.f32 %v379_v4, 0.0  ;;  %v381_v15 = vadd.f32 %v318_v10, %v255_v7  ;;  %v257_v17 = vld [vmem:[%s1052_s28 + $0xa8] sm:$0xff] }
  0x7e   : > { %v382_v16 = vadd.f32 %v319_v12, %v256_v11  ;;  %v320_v18 = vld [vmem:[%s1060_s24 + $0xa8] sm:$0xff]  ;;  %v258_v19 = vld [vmem:[%s1052_s28 + $0xb0] sm:$0xff]  ;;  %503 = vst [vmem:[%s1082_s20 + $0x78] sm:$0xff] %v440_v8  ;;  %v443_v20 = vmax.f32 %v380_v9, 0.0  ;;  %v321_v22 = vld [vmem:[%s1060_s24 + $0xb0] sm:$0xff] }
  0x7f   : > { %v383_v21 = vadd.f32 %v320_v18, %v257_v17  ;;  %v259_v23 = vld [vmem:[%s1052_s28 + $0xb8] sm:$0xff]  ;;  %v322_v24 = vld [vmem:[%s1060_s24 + $0xb8] sm:$0xff]  ;;  %504 = vst [vmem:[%s1082_s20 + $0x80] sm:$0xff] %v441_v13  ;;  %505 = vst [vmem:[%s1082_s20 + $0x88] sm:$0xff] %v442_v14  ;;  %v444_v25 = vmax.f32 %v381_v15, 0.0  ;;  %v384_v27 = vadd.f32 %v321_v22, %v258_v19 }
  0x80   : > { %v445_v26 = vmax.f32 %v382_v16, 0.0  ;;  %v385_v28 = vadd.f32 %v322_v24, %v259_v23  ;;  %v260_v29 = vld [vmem:[%s1052_s28 + $0xc0] sm:$0xff]  ;;  %v323_v30 = vld [vmem:[%s1060_s24 + $0xc0] sm:$0xff]  ;;  %v261_v31 = vld [vmem:[%s1052_s28 + $0xc8] sm:$0xff]  ;;  %506 = vst [vmem:[%s1082_s20 + $0x90] sm:$0xff] %v443_v20 }
  0x81   : > { %v446_v32 = vmax.f32 %v383_v21, 0.0  ;;  %v386_v33 = vadd.f32 %v323_v30, %v260_v29  ;;  %v324_v34 = vld [vmem:[%s1060_s24 + $0xc8] sm:$0xff]  ;;  %v262_v35 = vld [vmem:[%s1052_s28 + $0xd0] sm:$0xff]  ;;  %v325_v36 = vld [vmem:[%s1060_s24 + $0xd0] sm:$0xff]  ;;  %507 = vst [vmem:[%s1082_s20 + $0x98] sm:$0xff] %v444_v25  ;;  %v447_v37 = vmax.f32 %v384_v27, 0.0 }
  0x82   : > { %508 = vst [vmem:[%s1082_s20 + $0xa0] sm:$0xff] %v445_v26  ;;  %v448_v38 = vmax.f32 %v385_v28, 0.0  ;;  %v387_v39 = vadd.f32 %v324_v34, %v261_v31  ;;  %v388_v40 = vadd.f32 %v325_v36, %v262_v35  ;;  %v263_v41 = vld [vmem:[%s1052_s28 + $0xd8] sm:$0xff]  ;;  %v326_v42 = vld [vmem:[%s1060_s24 + $0xd8] sm:$0xff]  ;;  %v264_v43 = vld [vmem:[%s1052_s28 + $0xe0] sm:$0xff] }
  0x83   : > { %509 = vst [vmem:[%s1082_s20 + $0xa8] sm:$0xff] %v446_v32  ;;  %v449_v44 = vmax.f32 %v386_v33, 0.0  ;;  %v389_v45 = vadd.f32 %v326_v42, %v263_v41  ;;  %v327_v46 = vld [vmem:[%s1060_s24 + $0xe0] sm:$0xff]  ;;  %v265_v47 = vld [vmem:[%s1052_s28 + $0xe8] sm:$0xff]  ;;  %v328_v48 = vld [vmem:[%s1060_s24 + $0xe8] sm:$0xff] }
  0x84   : > { %510 = vst [vmem:[%s1082_s20 + $0xb0] sm:$0xff] %v447_v37  ;;  %511 = vst [vmem:[%s1082_s20 + $0xb8] sm:$0xff] %v448_v38  ;;  %v450_v49 = vmax.f32 %v387_v39, 0.0  ;;  %v451_v50 = vmax.f32 %v388_v40, 0.0  ;;  %v390_v51 = vadd.f32 %v327_v46, %v264_v43  ;;  %v391_v52 = vadd.f32 %v328_v48, %v265_v47  ;;  %v266_v53 = vld [vmem:[%s1052_s28 + $0xf0] sm:$0xff]  ;;  %v329_v54 = vld [vmem:[%s1060_s24 + $0xf0] sm:$0xff] }
  0x85   : > { %v267_v55 = vld [vmem:[%s1052_s28 + $0xf8] sm:$0xff]  ;;  %512 = vst [vmem:[%s1082_s20 + $0xc0] sm:$0xff] %v449_v44  ;;  %v452_v56 = vmax.f32 %v389_v45, 0.0  ;;  %v392_v57 = vadd.f32 %v329_v54, %v266_v53  ;;  %v330_v58 = vld [vmem:[%s1060_s24 + $0xf8] sm:$0xff]  ;;  %v268_v59 = vld [vmem:[%s1052_s28 + $0x100] sm:$0xff] }
  0x86   : > { %v331_v60 = vld [vmem:[%s1060_s24 + $0x100] sm:$0xff]  ;;  %513 = vst [vmem:[%s1082_s20 + $0xc8] sm:$0xff] %v450_v49  ;;  %514 = vst [vmem:[%s1082_s20 + $0xd0] sm:$0xff] %v451_v50  ;;  %v453_v61 = vmax.f32 %v390_v51, 0.0  ;;  %v454_v62 = vmax.f32 %v391_v52, 0.0  ;;  %v393_v63 = vadd.f32 %v330_v58, %v267_v55  ;;  %v269_v1 = vld [vmem:[%s1052_s28 + $0x108] sm:$0xff] }
  0x87   : > { %v394_v0 = vadd.f32 %v331_v60, %v268_v59  ;;  %v332_v2 = vld [vmem:[%s1060_s24 + $0x108] sm:$0xff]  ;;  %v270_v3 = vld [vmem:[%s1052_s28 + $0x110] sm:$0xff]  ;;  %515 = vst [vmem:[%s1082_s20 + $0xd8] sm:$0xff] %v452_v56  ;;  %v455_v4 = vmax.f32 %v392_v57, 0.0  ;;  %v333_v6 = vld [vmem:[%s1060_s24 + $0x110] sm:$0xff] }
  0x88   : > { %v395_v5 = vadd.f32 %v332_v2, %v269_v1  ;;  %v271_v7 = vld [vmem:[%s1052_s28 + $0x118] sm:$0xff]  ;;  %v334_v8 = vld [vmem:[%s1060_s24 + $0x118] sm:$0xff]  ;;  %516 = vst [vmem:[%s1082_s20 + $0xe0] sm:$0xff] %v453_v61  ;;  %517 = vst [vmem:[%s1082_s20 + $0xe8] sm:$0xff] %v454_v62  ;;  %v456_v9 = vmax.f32 %v393_v63, 0.0  ;;  %v396_v11 = vadd.f32 %v333_v6, %v270_v3 }
  0x89   : > { %v457_v10 = vmax.f32 %v394_v0, 0.0  ;;  %v397_v12 = vadd.f32 %v334_v8, %v271_v7  ;;  %v272_v13 = vld [vmem:[%s1052_s28 + $0x120] sm:$0xff]  ;;  %v335_v14 = vld [vmem:[%s1060_s24 + $0x120] sm:$0xff]  ;;  %v273_v15 = vld [vmem:[%s1052_s28 + $0x128] sm:$0xff]  ;;  %518 = vst [vmem:[%s1082_s20 + $0xf0] sm:$0xff] %v455_v4 }
  0x8a   : > { %v458_v16 = vmax.f32 %v395_v5, 0.0  ;;  %v398_v17 = vadd.f32 %v335_v14, %v272_v13  ;;  %v336_v18 = vld [vmem:[%s1060_s24 + $0x128] sm:$0xff]  ;;  %v274_v19 = vld [vmem:[%s1052_s28 + $0x130] sm:$0xff]  ;;  %v337_v20 = vld [vmem:[%s1060_s24 + $0x130] sm:$0xff]  ;;  %519 = vst [vmem:[%s1082_s20 + $0xf8] sm:$0xff] %v456_v9  ;;  %v459_v21 = vmax.f32 %v396_v11, 0.0 }
  0x8b   : > { %520 = vst [vmem:[%s1082_s20 + $0x100] sm:$0xff] %v457_v10  ;;  %v460_v22 = vmax.f32 %v397_v12, 0.0  ;;  %v399_v23 = vadd.f32 %v336_v18, %v273_v15  ;;  %v400_v24 = vadd.f32 %v337_v20, %v274_v19  ;;  %v275_v25 = vld [vmem:[%s1052_s28 + $0x138] sm:$0xff]  ;;  %v338_v26 = vld [vmem:[%s1060_s24 + $0x138] sm:$0xff]  ;;  %v276_v27 = vld [vmem:[%s1052_s28 + $0x140] sm:$0xff] }
  0x8c   : > { %521 = vst [vmem:[%s1082_s20 + $0x108] sm:$0xff] %v458_v16  ;;  %v461_v28 = vmax.f32 %v398_v17, 0.0  ;;  %v401_v29 = vadd.f32 %v338_v26, %v275_v25  ;;  %v339_v30 = vld [vmem:[%s1060_s24 + $0x140] sm:$0xff]  ;;  %v277_v31 = vld [vmem:[%s1052_s28 + $0x148] sm:$0xff]  ;;  %v340_v32 = vld [vmem:[%s1060_s24 + $0x148] sm:$0xff] }
  0x8d   : > { %522 = vst [vmem:[%s1082_s20 + $0x110] sm:$0xff] %v459_v21  ;;  %523 = vst [vmem:[%s1082_s20 + $0x118] sm:$0xff] %v460_v22  ;;  %v462_v33 = vmax.f32 %v399_v23, 0.0  ;;  %v463_v34 = vmax.f32 %v400_v24, 0.0  ;;  %v402_v35 = vadd.f32 %v339_v30, %v276_v27  ;;  %v403_v36 = vadd.f32 %v340_v32, %v277_v31  ;;  %v278_v37 = vld [vmem:[%s1052_s28 + $0x150] sm:$0xff]  ;;  %v341_v38 = vld [vmem:[%s1060_s24 + $0x150] sm:$0xff] }
  0x8e   : > { %v279_v39 = vld [vmem:[%s1052_s28 + $0x158] sm:$0xff]  ;;  %524 = vst [vmem:[%s1082_s20 + $0x120] sm:$0xff] %v461_v28  ;;  %v464_v40 = vmax.f32 %v401_v29, 0.0  ;;  %v404_v41 = vadd.f32 %v341_v38, %v278_v37  ;;  %v342_v42 = vld [vmem:[%s1060_s24 + $0x158] sm:$0xff]  ;;  %v280_v43 = vld [vmem:[%s1052_s28 + $0x160] sm:$0xff] }
  0x8f   : > { %v343_v44 = vld [vmem:[%s1060_s24 + $0x160] sm:$0xff]  ;;  %525 = vst [vmem:[%s1082_s20 + $0x128] sm:$0xff] %v462_v33  ;;  %526 = vst [vmem:[%s1082_s20 + $0x130] sm:$0xff] %v463_v34  ;;  %v465_v45 = vmax.f32 %v402_v35, 0.0  ;;  %v466_v46 = vmax.f32 %v403_v36, 0.0  ;;  %v405_v47 = vadd.f32 %v342_v42, %v279_v39  ;;  %v281_v49 = vld [vmem:[%s1052_s28 + $0x168] sm:$0xff] }
  0x90   : > { %v406_v48 = vadd.f32 %v343_v44, %v280_v43  ;;  %v344_v50 = vld [vmem:[%s1060_s24 + $0x168] sm:$0xff]  ;;  %v282_v51 = vld [vmem:[%s1052_s28 + $0x170] sm:$0xff]  ;;  %527 = vst [vmem:[%s1082_s20 + $0x138] sm:$0xff] %v464_v40  ;;  %v467_v52 = vmax.f32 %v404_v41, 0.0  ;;  %v345_v54 = vld [vmem:[%s1060_s24 + $0x170] sm:$0xff] }
  0x91   : > { %v407_v53 = vadd.f32 %v344_v50, %v281_v49  ;;  %v283_v55 = vld [vmem:[%s1052_s28 + $0x178] sm:$0xff]  ;;  %v346_v56 = vld [vmem:[%s1060_s24 + $0x178] sm:$0xff]  ;;  %528 = vst [vmem:[%s1082_s20 + $0x140] sm:$0xff] %v465_v45  ;;  %529 = vst [vmem:[%s1082_s20 + $0x148] sm:$0xff] %v466_v46  ;;  %v468_v57 = vmax.f32 %v405_v47, 0.0  ;;  %v408_v59 = vadd.f32 %v345_v54, %v282_v51 }
  0x92   : > { %v469_v58 = vmax.f32 %v406_v48, 0.0  ;;  %v409_v60 = vadd.f32 %v346_v56, %v283_v55  ;;  %v284_v61 = vld [vmem:[%s1052_s28 + $0x180] sm:$0xff]  ;;  %v347_v62 = vld [vmem:[%s1060_s24 + $0x180] sm:$0xff]  ;;  %v285_v63 = vld [vmem:[%s1052_s28 + $0x188] sm:$0xff]  ;;  %530 = vst [vmem:[%s1082_s20 + $0x150] sm:$0xff] %v467_v52 }
  0x93   : > { %v470_v0 = vmax.f32 %v407_v53, 0.0  ;;  %v410_v1 = vadd.f32 %v347_v62, %v284_v61  ;;  %v348_v2 = vld [vmem:[%s1060_s24 + $0x188] sm:$0xff]  ;;  %v286_v3 = vld [vmem:[%s1052_s28 + $0x190] sm:$0xff]  ;;  %v349_v4 = vld [vmem:[%s1060_s24 + $0x190] sm:$0xff]  ;;  %531 = vst [vmem:[%s1082_s20 + $0x158] sm:$0xff] %v468_v57  ;;  %v471_v5 = vmax.f32 %v408_v59, 0.0 }
  0x94   : > { %532 = vst [vmem:[%s1082_s20 + $0x160] sm:$0xff] %v469_v58  ;;  %v472_v6 = vmax.f32 %v409_v60, 0.0  ;;  %v411_v7 = vadd.f32 %v348_v2, %v285_v63  ;;  %v412_v8 = vadd.f32 %v349_v4, %v286_v3  ;;  %v287_v9 = vld [vmem:[%s1052_s28 + $0x198] sm:$0xff]  ;;  %v350_v10 = vld [vmem:[%s1060_s24 + $0x198] sm:$0xff]  ;;  %v288_v11 = vld [vmem:[%s1052_s28 + $0x1a0] sm:$0xff] }
  0x95   : > { %533 = vst [vmem:[%s1082_s20 + $0x168] sm:$0xff] %v470_v0  ;;  %v473_v12 = vmax.f32 %v410_v1, 0.0  ;;  %v413_v13 = vadd.f32 %v350_v10, %v287_v9  ;;  %v351_v14 = vld [vmem:[%s1060_s24 + $0x1a0] sm:$0xff]  ;;  %v289_v15 = vld [vmem:[%s1052_s28 + $0x1a8] sm:$0xff]  ;;  %v352_v16 = vld [vmem:[%s1060_s24 + $0x1a8] sm:$0xff] }
  0x96   : > { %534 = vst [vmem:[%s1082_s20 + $0x170] sm:$0xff] %v471_v5  ;;  %535 = vst [vmem:[%s1082_s20 + $0x178] sm:$0xff] %v472_v6  ;;  %v474_v17 = vmax.f32 %v411_v7, 0.0  ;;  %v475_v18 = vmax.f32 %v412_v8, 0.0  ;;  %v414_v19 = vadd.f32 %v351_v14, %v288_v11  ;;  %v415_v20 = vadd.f32 %v352_v16, %v289_v15  ;;  %v290_v21 = vld [vmem:[%s1052_s28 + $0x1b0] sm:$0xff]  ;;  %v353_v22 = vld [vmem:[%s1060_s24 + $0x1b0] sm:$0xff] }
  0x97   : > { %v291_v23 = vld [vmem:[%s1052_s28 + $0x1b8] sm:$0xff]  ;;  %536 = vst [vmem:[%s1082_s20 + $0x180] sm:$0xff] %v473_v12  ;;  %v476_v24 = vmax.f32 %v413_v13, 0.0  ;;  %v416_v25 = vadd.f32 %v353_v22, %v290_v21  ;;  %v354_v26 = vld [vmem:[%s1060_s24 + $0x1b8] sm:$0xff]  ;;  %v292_v27 = vld [vmem:[%s1052_s28 + $0x1c0] sm:$0xff] }
  0x98   : > { %v355_v28 = vld [vmem:[%s1060_s24 + $0x1c0] sm:$0xff]  ;;  %537 = vst [vmem:[%s1082_s20 + $0x188] sm:$0xff] %v474_v17  ;;  %538 = vst [vmem:[%s1082_s20 + $0x190] sm:$0xff] %v475_v18  ;;  %v477_v29 = vmax.f32 %v414_v19, 0.0  ;;  %v478_v30 = vmax.f32 %v415_v20, 0.0  ;;  %v417_v31 = vadd.f32 %v354_v26, %v291_v23  ;;  %v293_v33 = vld [vmem:[%s1052_s28 + $0x1c8] sm:$0xff] }
  0x99   : > { %v418_v32 = vadd.f32 %v355_v28, %v292_v27  ;;  %v356_v34 = vld [vmem:[%s1060_s24 + $0x1c8] sm:$0xff]  ;;  %v294_v35 = vld [vmem:[%s1052_s28 + $0x1d0] sm:$0xff]  ;;  %539 = vst [vmem:[%s1082_s20 + $0x198] sm:$0xff] %v476_v24  ;;  %v479_v36 = vmax.f32 %v416_v25, 0.0  ;;  %v357_v38 = vld [vmem:[%s1060_s24 + $0x1d0] sm:$0xff] }
  0x9a   : > { %v419_v37 = vadd.f32 %v356_v34, %v293_v33  ;;  %v295_v39 = vld [vmem:[%s1052_s28 + $0x1d8] sm:$0xff]  ;;  %v358_v40 = vld [vmem:[%s1060_s24 + $0x1d8] sm:$0xff]  ;;  %540 = vst [vmem:[%s1082_s20 + $0x1a0] sm:$0xff] %v477_v29  ;;  %541 = vst [vmem:[%s1082_s20 + $0x1a8] sm:$0xff] %v478_v30  ;;  %v480_v41 = vmax.f32 %v417_v31, 0.0  ;;  %v420_v43 = vadd.f32 %v357_v38, %v294_v35 }
  0x9b   : > { %v481_v42 = vmax.f32 %v418_v32, 0.0  ;;  %v421_v44 = vadd.f32 %v358_v40, %v295_v39  ;;  %v296_v45 = vld [vmem:[%s1052_s28 + $0x1e0] sm:$0xff]  ;;  %v359_v46 = vld [vmem:[%s1060_s24 + $0x1e0] sm:$0xff]  ;;  %v297_v47 = vld [vmem:[%s1052_s28 + $0x1e8] sm:$0xff]  ;;  %542 = vst [vmem:[%s1082_s20 + $0x1b0] sm:$0xff] %v479_v36  ;;  %558 = sbr.rel (!%p1327_p6) target bundleno = 191 (0xbf), region = 40 }
  0x9c   : > { %v482_v48 = vmax.f32 %v419_v37, 0.0  ;;  %v422_v49 = vadd.f32 %v359_v46, %v296_v45  ;;  %v360_v50 = vld [vmem:[%s1060_s24 + $0x1e8] sm:$0xff]  ;;  %v298_v51 = vld [vmem:[%s1052_s28 + $0x1f0] sm:$0xff]  ;;  %v361_v52 = vld [vmem:[%s1060_s24 + $0x1f0] sm:$0xff]  ;;  %543 = vst [vmem:[%s1082_s20 + $0x1b8] sm:$0xff] %v480_v41  ;;  %v483_v53 = vmax.f32 %v420_v43, 0.0 }
  0x9d   : > { %544 = vst [vmem:[%s1082_s20 + $0x1c0] sm:$0xff] %v481_v42  ;;  %v484_v54 = vmax.f32 %v421_v44, 0.0  ;;  %v423_v55 = vadd.f32 %v360_v50, %v297_v47  ;;  %v424_v56 = vadd.f32 %v361_v52, %v298_v51 }
  0x9e   : > { %545 = vst [vmem:[%s1082_s20 + $0x1c8] sm:$0xff] %v482_v48  ;;  %v485_v57 = vmax.f32 %v422_v49, 0.0  ;;  %546 = vst [vmem:[%s1082_s20 + $0x1d0] sm:$0xff] %v483_v53 }
  0x9f   : > { %547 = vst [vmem:[%s1082_s20 + $0x1d8] sm:$0xff] %v484_v54  ;;  %v486_v58 = vmax.f32 %v423_v55, 0.0  ;;  %v487_v59 = vmax.f32 %v424_v56, 0.0 }
  0xa0   : > { %548 = vst [vmem:[%s1082_s20 + $0x1e0] sm:$0xff] %v485_v57 }
  0xa1   : > { %549 = vst [vmem:[%s1082_s20 + $0x1e8] sm:$0xff] %v486_v58  ;;  %550 = vst [vmem:[%s1082_s20 + $0x1f0] sm:$0xff] %v487_v59 }
  0xa2   : > { %s1338_s30 = smov (!%p561_p5, %s560_s30), 3 }
  0xa3   : > { %s1262_s3 = smul.u32 2688, %s1338_s30 }
  0xa5   : > { %s566_s5 = ssub.s32 8064, %s1262_s3 }
  0xa6   : > { %567 = vsyncadd %s552_s29, %s566_s5  ;;  %p685_p1 = scmp.ne.s32.totalorder %s1262_s3, 0  ;;  %s705_s21 = smul.u32 8064, %s918_s13 }
  0xa7   : > { %s573_s6 = sshll.u32 %s1082_s20, 4  ;;  %s879_s27 = smov [#allocation7]   ;;  %s1275_s6 = int_to_ptr.vmem [resolvable:$true] %s573_s6 }
  0xa8   : > { %s1273_s16 = scalar_lea.hbm %s1322_s2, %s705_s21  ;;  %s801_s23 = scalar_lea.vmem %s1275_s6, %s1262_s3 }
  0xa9   : > { %p802_p3 = scmp.ne.s32.totalorder %s1275_s6, %s801_s23  ;;  %s805_s19 = sshll.u32 %s879_s27, 4  ;;  %s806_s19 = int_to_ptr.vmem [resolvable:$false] %s805_s19 }
  0xaa   : > { %s807_s13 = scalar_lea.vmem %s806_s19, 16128  ;;  %p808_p9 = scmp.lt.s32.totalorder %s1275_s6, %s806_s19 }
  0xab   : > { %p803_p4 = pnand %p802_p3, %p685_p1  ;;  %p809_p10 = scmp.lt.s32.totalorder %s807_s13, %s801_s23 }
  0xad   : > { %p804_p7 = pneg %p803_p4  ;;  %p810_p13 = por %p809_p10, %p808_p9 }
  0xaf   : > { %p811_p8 = pnand %p810_p13, %p804_p7 }
  0xb1   : > { %814 = shalt.err (!%p811_p8)
}
  0xb2   : > { %s815_s7 = scalar_lea.hbm %s1273_s16, %s1262_s3  ;;  %s819_s17 = scalar_lea.hbm %s1322_s2, 34944 }
  0xb3   : > { %p816_p11 = scmp.ne.s32.totalorder %s1273_s16, %s815_s7  ;;  %p820_p0 = scmp.lt.u32.totalorder %s1273_s16, %s1322_s2 }
  0xb4   : > { %p821_p6 = scmp.lt.u32.totalorder %s819_s17, %s815_s7  ;;  %p823_p3 = scmp.lt.u32.totalorder %s815_s7, %s1273_s16 }
  0xb5   : > { %p817_p2 = pnand %p816_p11, %p685_p1 }
  0xb6   : > { %p822_p5 = por %p821_p6, %p820_p0 }
  0xb7   : > { %p818_p12 = pneg %p817_p2 }
  0xb8   : > { %p824_p4 = por %p823_p3, %p822_p5 }
  0xba   : > { %p825_p7 = pnand %p824_p4, %p818_p12 }
  0xbc   : > { %828 = shalt.err (!%p825_p7)
}
  0xbd   : > { %s880_s25 = smov 2688   ;;  %s881_s30 = smov 168  }
  0xbe   : > { %579 = dma.vmem_to_hbm [thread:$0]  (%p685_p1), %s1275_s6, %s1262_s3, %s1273_s16, %s552_s29, %s880_s25, %s880_s25, %s881_s30  }
  0xbf PF: > { %p706_p9 = scmp.ge.s32.totalorder %s871_s12, 2  ;;  %s588_s5 = sand.u32 1, %s859_s9  }
  0xc0   : > { %p1328_p10 = scmp.ne.s32.totalorder %s1326_s22, 0  ;;  %s589_s21 = scalar_lea.sflag [#allocation4], %s588_s5 }
  0xc2   : > { %p700_p13 = pnand %p706_p9, %p1328_p10 }
  0xc4   : > { %854 = dma.done.wait (!%p700_p13), %s589_s21, 8064  }
  0xc5   : > { %856 = vsyncadd (!%p700_p13), %s589_s21, 4294959232  ;;  %p18_p8 = scmp.ge.s32.totalorder %s922_s15, 7   ;;  %s1329_s9 = smov %s863_s10 }
  0xc6   : > { %s1330_s10 = smov %s867_s11  ;;  %s1331_s11 = smov %s934_s18 }
  0xc7   : > { %s1332_s12 = smov %s922_s15  ;;  %20 = sbr.rel (!%p18_p8) target bundleno = 7 (0x7), region = 86 }
  0xce   :  { %594 = vsyncpa [#allocation3], 1 }
  0xcf   :  { %596 = vsyncpa [#allocation3 + $0x1], 1 }
  0xd0   :  { %597 = vsyncpa [#allocation6], 1 }
  0xd1   :  { %599 = vsyncpa [#allocation6 + $0x1], 1 }
  0xd2   :  { %600 = vsyncpa [#allocation4], 1 }
  0xd3   :  { %602 = vsyncpa [#allocation4 + $0x1], 1 }

</bundles_post_ra>
